<compile_context>
chip_gen: v7x
topology: tpu7x:2x2x1
jax: 0.10.0
libtpu: 0.0.40
codegen_flags: <defaults>
</compile_context>

<pallas_src>
import jax
import jax.numpy as jnp
from jax.experimental import pallas as pl
from jax.experimental.pallas import tpu as pltpu

# --- SARSA dimensions (from the module __init__) ---
CTX_ID_LEN = 68
CTX_DENSE_LEN = 18
ACT_ID_LEN = 29
ACT_DENSE_LEN = 0
ALL_FEAT = CTX_ID_LEN + CTX_DENSE_LEN + ACT_ID_LEN + ACT_DENSE_LEN   # 115
EMB = 8
INPUT_LEN = CTX_ID_LEN * EMB + CTX_DENSE_LEN + ACT_ID_LEN * EMB + ACT_DENSE_LEN  # 794
PAD_K = 896            # 7 * 128 -- lane-aligned contraction dim (794 + 102 zeros)
HIDDEN = 512
VOCAB = 2000

VMEM_LIMIT_BYTES = 32 * 1024 * 1024   # explicit: above v5e's 16 MiB scoped default


def _round_up(x, m):
    return ((x + m - 1) // m) * m


def _cdiv(a, b):
    return (a + b - 1) // b


def _pick_tile(B, tb):
    """Pick a batch tile: multiple of 16 (bf16 sublane packing), <= tb, and
    >= 2 tiles whenever B >= 32 so v7x's two TensorCores both get work."""
    b16 = _round_up(max(B, 1), 16)
    if b16 < 32:
        return b16
    ntiles = max(2, _cdiv(b16, tb))
    return _round_up(_cdiv(b16, ntiles), 16)


# ------------- Pallas kernel: bf16 Linear(896,512) -> ReLU -> VPU/XLU dot(512 -> 1) -------------
def mlp_kernel(x_ref, w1_ref, b1_ref, w2_ref, b2_ref, o_ref):
    # x_ref:  (TB, 896)  bf16     w1_ref: (896, 512) bf16
    # b1_ref: (1, 512)   f32      w2_ref: (1, 512)   f32
    # b2_ref: (1,)       f32 SMEM o_ref:  (TB, 1)    f32
    h = jnp.dot(x_ref[...], w1_ref[...], preferred_element_type=jnp.float32)
    h = jnp.maximum(h + b1_ref[...], 0.0)
    # Second layer has N=1: keep it off the MXU. Sum the four 128-lane blocks
    # on the VPU (vreg-aligned slices, no relayout), then one cross-lane
    # reduce on a (TB, 128) slab on the XLU.
    hw = h * w2_ref[...]
    partial = hw[:, 0:128]
    for j in range(1, HIDDEN // 128):
        partial = partial + hw[:, j * 128:(j + 1) * 128]
    y = jnp.sum(partial, axis=-1, keepdims=True) + b2_ref[0]
    o_ref[...] = y.astype(o_ref.dtype)


def sarsa_mlp(x_bf16, w1_pad_bf16, b1_2d, w2_row, b2_vec, *, tb=2048):
    """x_bf16: (B, PAD_K) bf16, w1_pad_bf16: (PAD_K, HIDDEN) bf16,
    b1_2d: (1, HIDDEN) f32, w2_row: (1, HIDDEN) f32, b2_vec: (1,) f32."""
    B = x_bf16.shape[0]
    TB = _pick_tile(B, tb)
    Bp = _round_up(B, TB)
    if Bp != B:
        x_bf16 = jnp.pad(x_bf16, ((0, Bp - B), (0, 0)))

    grid = (Bp // TB,)

    cost = pl.CostEstimate(
        flops=2 * Bp * PAD_K * HIDDEN + 2 * Bp * HIDDEN,
        transcendentals=0,
        bytes_accessed=(Bp * PAD_K * 2            # x tiles (bf16)
                        + PAD_K * HIDDEN * 2      # w1 (bf16, VMEM-resident)
                        + 2 * HIDDEN * 4 + 4      # b1, w2_row, b2
                        + Bp * 4),                # output
    )

    out = pl.pallas_call(
        mlp_kernel,
        out_shape=jax.ShapeDtypeStruct((Bp, 1), jnp.float32),
        grid_spec=pl.GridSpec(
            grid=grid,
            in_specs=[
                pl.BlockSpec((TB, PAD_K), lambda i: (i, 0)),          # x: tiled over batch
                pl.BlockSpec((PAD_K, HIDDEN), lambda i: (0, 0)),      # w1: VMEM-resident
                pl.BlockSpec((1, HIDDEN), lambda i: (0, 0)),          # b1: resident
                pl.BlockSpec((1, HIDDEN), lambda i: (0, 0)),          # w2 row: resident
                pl.BlockSpec(memory_space=pltpu.MemorySpace.SMEM),    # b2 scalar
            ],
            out_specs=pl.BlockSpec((TB, 1), lambda i: (i, 0)),
        ),
        compiler_params=pltpu.CompilerParams(
            dimension_semantics=("parallel",),
            vmem_limit_bytes=VMEM_LIMIT_BYTES),
        cost_estimate=cost,
    )(x_bf16, w1_pad_bf16, b1_2d, w2_row, b2_vec)
    return out[:B]


# ------------- One-time parameter preprocessing (hoisted out of the forward) -------------
def prepare_params(params):
    """Pad/cast/reshape weights once per parameter update, not per forward."""
    emb, w1, b1, w2, b2 = params
    emb_bf16 = emb.astype(jnp.bfloat16)
    w1_pad = jnp.pad(w1, ((0, PAD_K - INPUT_LEN), (0, 0))).astype(jnp.bfloat16)
    b1_2d = b1.reshape(1, HIDDEN).astype(jnp.float32)
    w2_row = w2.reshape(1, HIDDEN).astype(jnp.float32)
    b2_vec = b2.reshape(1).astype(jnp.float32)
    return (emb_bf16, w1_pad, b1_2d, w2_row, b2_vec)


# ------------- Full forward (glue: bf16 gather + concat, hot path: Pallas MLP) -------------
def sarsa_forward(x, prepared, *, tb=2048):
    emb_bf16, w1_pad_bf16, b1_2d, w2_row, b2_vec = prepared
    features = x.reshape(-1, ALL_FEAT)
    B = features.shape[0]

    context_ids = features[:, :CTX_ID_LEN].astype(jnp.int32)                    # (B, 68)
    context_dense = features[:, CTX_ID_LEN:CTX_ID_LEN + CTX_DENSE_LEN]          # (B, 18)
    action_ids = features[:, CTX_ID_LEN + CTX_DENSE_LEN:].astype(jnp.int32)     # (B, 29)

    # Gather directly from the bf16 table; build the (B, 896) activation once,
    # already in bf16, with the K-pad fused into the same concat.
    ctx_emb = emb_bf16[context_ids.reshape(-1)].reshape(B, CTX_ID_LEN * EMB)    # (B, 544) bf16
    act_emb = emb_bf16[action_ids.reshape(-1)].reshape(B, ACT_ID_LEN * EMB)     # (B, 232) bf16
    dense_bf16 = context_dense.astype(jnp.bfloat16)                             # (B, 18)
    pad = jnp.zeros((B, PAD_K - INPUT_LEN), dtype=jnp.bfloat16)
    batch_input = jnp.concatenate([ctx_emb, act_emb, dense_bf16, pad], axis=1)  # (B, 896) bf16

    return sarsa_mlp(batch_input, w1_pad_bf16, b1_2d, w2_row, b2_vec, tb=tb)


def sarsa_forward_ref(x, params, mxu_dtype=jnp.float32):
    """Pure-JAX reference for correctness checking."""
    emb, w1, b1, w2, b2 = params
    features = x.reshape(-1, ALL_FEAT)
    context_ids = features[:, :CTX_ID_LEN].astype(jnp.int32)
    context_dense = features[:, CTX_ID_LEN:CTX_ID_LEN + CTX_DENSE_LEN]
    action_ids = features[:, CTX_ID_LEN + CTX_DENSE_LEN:].astype(jnp.int32)
    ctx_emb = emb[context_ids.reshape(-1)].reshape(-1, CTX_ID_LEN * EMB)
    act_emb = emb[action_ids.reshape(-1)].reshape(-1, ACT_ID_LEN * EMB)
    bi = jnp.concatenate([ctx_emb, act_emb, context_dense], axis=1)
    h = jnp.dot(bi.astype(mxu_dtype), w1.astype(mxu_dtype),
                preferred_element_type=jnp.float32) + b1
    h = jnp.maximum(h, 0.0)
    return h @ w2 + b2


def init_params(key):
    k_emb, k_w1, k_b1, k_w2, k_b2 = jax.random.split(key, 5)
    emb = jax.random.normal(k_emb, (VOCAB, EMB), dtype=jnp.float32)
    w1 = jax.random.normal(k_w1, (INPUT_LEN, HIDDEN), dtype=jnp.float32) * (1.0 / jnp.sqrt(INPUT_LEN))
    b1 = jax.random.normal(k_b1, (HIDDEN,), dtype=jnp.float32) * 0.01
    w2 = jax.random.normal(k_w2, (HIDDEN, 1), dtype=jnp.float32) * (1.0 / jnp.sqrt(HIDDEN))
    b2 = jax.random.normal(k_b2, (1,), dtype=jnp.float32) * 0.01
    return (emb, w1, b1, w2, b2)


if __name__ == "__main__":
    key = jax.random.PRNGKey(0)
    k_params, k_ids, k_dense = jax.random.split(key, 3)

    params = init_params(k_params)
    prepared = prepare_params(params)   # once per parameter update

    # Small batch of synthetic feature rows: id columns hold integer indices
    # into the 2000-row embedding table (stored as float, cast to int inside
    # the forward, mirroring `.to(torch.long)`); dense columns are floats.
    B = 16
    ids = jax.random.randint(k_ids, (B, CTX_ID_LEN + ACT_ID_LEN), 0, VOCAB).astype(jnp.float32)
    dense = jax.random.normal(k_dense, (B, CTX_DENSE_LEN), dtype=jnp.float32)
    x = jnp.concatenate([ids[:, :CTX_ID_LEN], dense, ids[:, CTX_ID_LEN:]], axis=1)  # (B, 115)

    fwd = jax.jit(sarsa_forward)
    out = jax.block_until_ready(fwd(x, prepared))
    ref_bf16 = jax.block_until_ready(sarsa_forward_ref(x, params, mxu_dtype=jnp.bfloat16))
    ref_f32 = jax.block_until_ready(sarsa_forward_ref(x, params, mxu_dtype=jnp.float32))

    assert out.shape == (B, 1), out.shape
    # Tight check against a reference that uses the same bf16-operand matmul.
    assert jnp.allclose(out, ref_bf16, atol=2e-3, rtol=2e-3), (out, ref_bf16)
    # Loose check against the full-f32 reference (bf16 MXU rounding allowance).
    max_abs_err = jnp.max(jnp.abs(out - ref_f32))
    assert max_abs_err < 1e-1, float(max_abs_err)
    print("KERNEL_OK")
</pallas_src>

<mosaic_0001>
module attributes {stable_mosaic.version = 11 : i64} {
  func.func @mlp_kernel(%arg0: i32, %arg1: memref<16x896xbf16, #tpu.memory_space<vmem>>, %arg2: memref<896x512xbf16, #tpu.memory_space<vmem>>, %arg3: memref<1x512xf32, #tpu.memory_space<vmem>>, %arg4: memref<1x512xf32, #tpu.memory_space<vmem>>, %arg5: memref<1xf32, #tpu.memory_space<smem>>, %arg6: memref<16x1xf32, #tpu.memory_space<vmem>>) attributes {dimension_semantics = [#tpu.dimension_semantics<parallel>], iteration_bounds = array<i64: 1>, scalar_prefetch = 0 : i64, scratch_operands = 0 : i64, tpu.core_type = #tpu.core_type<tc>, window_params = [{transform_indices = @transform_0, window_bounds = array<i64: 16, 896>}, {pipeline_mode = #tpu.pipeline_mode<synchronous>, transform_indices = @transform_1, window_bounds = array<i64: 896, 512>}, {pipeline_mode = #tpu.pipeline_mode<synchronous>, transform_indices = @transform_2, window_bounds = array<i64: 1, 512>}, {pipeline_mode = #tpu.pipeline_mode<synchronous>, transform_indices = @transform_3, window_bounds = array<i64: 1, 512>}, {transform_indices = @transform_4, window_bounds = array<i64: 1>}, {transform_indices = @transform_5, window_bounds = array<i64: 16, 1>}]} {
    %c0 = arith.constant 0 : index
    %c0_0 = arith.constant 0 : index
    %0 = vector.load %arg1[%c0, %c0_0] : memref<16x896xbf16, #tpu.memory_space<vmem>>, vector<16x896xbf16>
    %c0_1 = arith.constant 0 : index
    %c0_2 = arith.constant 0 : index
    %1 = vector.load %arg2[%c0_1, %c0_2] : memref<896x512xbf16, #tpu.memory_space<vmem>>, vector<896x512xbf16>
    %cst = arith.constant dense<0.000000e+00> : vector<16x512xf32>
    %2 = tpu.matmul %0, %1, %cst {dimension_numbers = #tpu.dot_dimension_numbers<[1], [0], [0], [1], [0, 0, 1, 1], [], []>} : vector<16x896xbf16>, vector<896x512xbf16>, vector<16x512xf32> -> vector<16x512xf32>
    %c0_3 = arith.constant 0 : index
    %c0_4 = arith.constant 0 : index
    %3 = vector.load %arg3[%c0_3, %c0_4] : memref<1x512xf32, #tpu.memory_space<vmem>>, vector<1x512xf32>
    %4 = vector.broadcast %3 : vector<1x512xf32> to vector<16x512xf32>
    %5 = arith.addf %2, %4 : vector<16x512xf32>
    %cst_5 = arith.constant 0.000000e+00 : f32
    %6 = vector.broadcast %cst_5 : f32 to vector<16x512xf32>
    %7 = arith.maximumf %5, %6 : vector<16x512xf32>
    %c0_6 = arith.constant 0 : index
    %c0_7 = arith.constant 0 : index
    %8 = vector.load %arg4[%c0_6, %c0_7] : memref<1x512xf32, #tpu.memory_space<vmem>>, vector<1x512xf32>
    %9 = vector.broadcast %8 : vector<1x512xf32> to vector<16x512xf32>
    %10 = arith.mulf %7, %9 : vector<16x512xf32>
    %11 = vector.extract_strided_slice %10 {offsets = [0, 0], sizes = [16, 128], strides = [1, 1]} : vector<16x512xf32> to vector<16x128xf32>
    %12 = vector.extract_strided_slice %10 {offsets = [0, 128], sizes = [16, 128], strides = [1, 1]} : vector<16x512xf32> to vector<16x128xf32>
    %13 = arith.addf %11, %12 : vector<16x128xf32>
    %14 = vector.extract_strided_slice %10 {offsets = [0, 256], sizes = [16, 128], strides = [1, 1]} : vector<16x512xf32> to vector<16x128xf32>
    %15 = arith.addf %13, %14 : vector<16x128xf32>
    %16 = vector.extract_strided_slice %10 {offsets = [0, 384], sizes = [16, 128], strides = [1, 1]} : vector<16x512xf32> to vector<16x128xf32>
    %17 = arith.addf %15, %16 : vector<16x128xf32>
    %cst_8 = arith.constant dense<0.000000e+00> : vector<16xf32>
    %18 = vector.multi_reduction <add>, %17, %cst_8 [1] : vector<16x128xf32> to vector<16xf32>
    %19 = vector.shape_cast %18 : vector<16xf32> to vector<16x1xf32>
    %c0_9 = arith.constant 0 : index
    %20 = memref.load %arg5[%c0_9] : memref<1xf32, #tpu.memory_space<smem>>
    %21 = vector.broadcast %20 : f32 to vector<16x1xf32>
    %22 = arith.addf %19, %21 : vector<16x1xf32>
    %c0_10 = arith.constant 0 : index
    %c0_11 = arith.constant 0 : index
    %23 = vector.load %arg6[%c0_10, %c0_11] : memref<16x1xf32, #tpu.memory_space<vmem>>, vector<16x1xf32>
    tpu.vector_store %arg6[%c0_10, %c0_11], %22 {strides = array<i32>} : memref<16x1xf32, #tpu.memory_space<vmem>>, vector<16x1xf32>,
    return
  }
  func.func @transform_0(%arg0: i32) -> (i32, i32) {
    %c0_i32 = arith.constant 0 : i32
    %c0_i32_0 = arith.constant 0 : i32
    return %arg0, %c0_i32 : i32, i32
  }
  func.func @transform_1(%arg0: i32) -> (i32, i32) {
    %c0_i32 = arith.constant 0 : i32
    %c0_i32_0 = arith.constant 0 : i32
    %c0_i32_1 = arith.constant 0 : i32
    return %c0_i32, %c0_i32_0 : i32, i32
  }
  func.func @transform_2(%arg0: i32) -> (i32, i32) {
    %c0_i32 = arith.constant 0 : i32
    %c0_i32_0 = arith.constant 0 : i32
    %c0_i32_1 = arith.constant 0 : i32
    return %c0_i32, %c0_i32_0 : i32, i32
  }
  func.func @transform_3(%arg0: i32) -> (i32, i32) {
    %c0_i32 = arith.constant 0 : i32
    %c0_i32_0 = arith.constant 0 : i32
    %c0_i32_1 = arith.constant 0 : i32
    return %c0_i32, %c0_i32_0 : i32, i32
  }
  func.func @transform_4(%arg0: i32) -> i32 {
    %c0_i32 = arith.constant 0 : i32
    %c0_i32_0 = arith.constant 0 : i32
    return %c0_i32 : i32
  }
  func.func @transform_5(%arg0: i32) -> (i32, i32) {
    %c0_i32 = arith.constant 0 : i32
    %c0_i32_0 = arith.constant 0 : i32
    return %arg0, %c0_i32 : i32, i32
  }
}

</mosaic_0001>

<bundles_post_ra>
// kernel: sarsa_forward.1
= control target key start
LH: loop header
LB: loop body
LE: loop exit
PB: predicated region body
PF: predicated region fallthrough
CT: control target
= control target key end

     0   :  { %vm1828_vm0 = vcmask 7168   ;;  %s3184_s1 = inlined_call_operand.vmem [shape: bf16[896,512], index: 1, kind: input, shape index: {}]   ;;  %s3185_s0 = inlined_call_operand.vmem [shape: bf16[16,896], index: 0, kind: input, shape index: {}]   ;;  %s3186_s2 = inlined_call_operand.vmem [shape: f32[1,512], index: 2, kind: input, shape index: {}]   ;;  %s3187_s3 = inlined_call_operand.vmem [shape: f32[1,512], index: 3, kind: input, shape index: {}]   ;;  %s3188_s4 = inlined_call_operand.<no memory space> [shape: f32[1], index: 4, kind: input, shape index: {}]   ;;  %s3189_s5 = inlined_call_operand.vmem [shape: f32[16,1], index: 5, kind: output, shape index: {}]  }
   0x1   :  { %v2099_v0 = vld [vmem:[%s3184_s1 + $0x4] ss:$16 sps:$4 sm:$0xff]   ;;  %v2101_v1 = vld [vmem:[%s3184_s1 + $0xc] ss:$16 sps:$4 sm:$0xff]   ;;  %v2103_v2 = vld [vmem:[%s3184_s1] ss:$16 sps:$4 sm:$0xff]  }
   0x2   :  { %1432 = vmatprep.subr.bf16.mxu0 %v2099_v0  ;;  %v2104_v3 = vld [vmem:[%s3184_s1 + $0x8] ss:$16 sps:$4 sm:$0xff]   ;;  %1604 = vmatprep.subr.bf16.mxu1 %v2101_v1  ;;  %v2105_v4 = vld [vmem:[%s3184_s1 + $0x24] ss:$16 sps:$4 sm:$0xff]   ;;  %v2107_v5 = vld [vmem:[%s3184_s1 + $0x2c] ss:$16 sps:$4 sm:$0xff]  }
   0x3   :  { %1433 = vmatpush1.bf16.msra.mxu0 %v2103_v2  ;;  %1605 = vmatpush1.bf16.msra.mxu1 %v2104_v3  ;;  %v2109_v6 = vld [vmem:[%s3184_s1 + $0x20] ss:$16 sps:$4 sm:$0xff]   ;;  %v2110_v7 = vld [vmem:[%s3184_s1 + $0x28] ss:$16 sps:$4 sm:$0xff]   ;;  %v2111_v8 = vld [vmem:[%s3184_s1 + $0x44] ss:$16 sps:$4 sm:$0xff]  }
   0x4   :  { %1434 = vmatprep.subr.bf16.mxu0 %v2105_v4  ;;  %1606 = vmatprep.subr.bf16.mxu1 %v2107_v5  ;;  %v2113_v9 = vld [vmem:[%s3184_s1 + $0x4c] ss:$16 sps:$4 sm:$0xff]   ;;  %v2115_v10 = vld [vmem:[%s3184_s1 + $0x40] ss:$16 sps:$4 sm:$0xff]   ;;  %v2116_v11 = vld [vmem:[%s3184_s1 + $0x48] ss:$16 sps:$4 sm:$0xff]  }
   0x5   :  { %v2117_v12 = vld [vmem:[%s3184_s1 + $0x64] ss:$16 sps:$4 sm:$0xff]   ;;  %v2119_v13 = vld [vmem:[%s3184_s1 + $0x6c] ss:$16 sps:$4 sm:$0xff]   ;;  %v2121_v14 = vld [vmem:[%s3184_s1 + $0x60] ss:$16 sps:$4 sm:$0xff]  }
   0x6   :  { %v2122_v15 = vld [vmem:[%s3184_s1 + $0x68] ss:$16 sps:$4 sm:$0xff]   ;;  %v2123_v16 = vld [vmem:[%s3184_s1 + $0x84] ss:$16 sps:$4 sm:$0xff]   ;;  %v2125_v17 = vld [vmem:[%s3184_s1 + $0x8c] ss:$16 sps:$4 sm:$0xff]  }
   0x7   :  { %1435 = vmatpush1.bf16.msra.mxu0 %v2109_v6  ;;  %1607 = vmatpush1.bf16.msra.mxu1 %v2110_v7  ;;  %v2127_v18 = vld [vmem:[%s3184_s1 + $0x80] ss:$16 sps:$4 sm:$0xff]   ;;  %v2128_v19 = vld [vmem:[%s3184_s1 + $0x88] ss:$16 sps:$4 sm:$0xff]   ;;  %v2129_v20 = vld [vmem:[%s3184_s1 + $0xa4] ss:$16 sps:$4 sm:$0xff]  }
   0x8   :  { %1436 = vmatprep.subr.bf16.mxu0 %v2111_v8  ;;  %1608 = vmatprep.subr.bf16.mxu1 %v2113_v9  ;;  %v2131_v21 = vld [vmem:[%s3184_s1 + $0xac] ss:$16 sps:$4 sm:$0xff]   ;;  %v2133_v22 = vld [vmem:[%s3184_s1 + $0xa0] ss:$16 sps:$4 sm:$0xff]   ;;  %v2134_v23 = vld [vmem:[%s3184_s1 + $0xa8] ss:$16 sps:$4 sm:$0xff]  }
   0x9   :  { %v2135_v24 = vld [vmem:[%s3184_s1 + $0xc4] ss:$16 sps:$4 sm:$0xff]   ;;  %v2137_v25 = vld [vmem:[%s3184_s1 + $0xcc] ss:$16 sps:$4 sm:$0xff]   ;;  %v2139_v26 = vld [vmem:[%s3184_s1 + $0xc0] ss:$16 sps:$4 sm:$0xff]  }
   0xa   :  { %v2140_v27 = vld [vmem:[%s3184_s1 + $0xc8] ss:$16 sps:$4 sm:$0xff]   ;;  %v2141_v28 = vld [vmem:[%s3184_s1 + $0xe4] ss:$16 sps:$4 sm:$0xff]   ;;  %v2143_v29 = vld [vmem:[%s3184_s1 + $0xec] ss:$16 sps:$4 sm:$0xff]  }
   0xb   :  { %1437 = vmatpush1.bf16.msra.mxu0 %v2115_v10  ;;  %1609 = vmatpush1.bf16.msra.mxu1 %v2116_v11  ;;  %v2145_v30 = vld [vmem:[%s3184_s1 + $0xe0] ss:$16 sps:$4 sm:$0xff]   ;;  %v2146_v31 = vld [vmem:[%s3184_s1 + $0xe8] ss:$16 sps:$4 sm:$0xff]   ;;  %v2147_v32 = vld [vmem:[%s3184_s1 + $0x104] ss:$16 sps:$4 sm:$0xff]  }
   0xc   :  { %1438 = vmatprep.subr.bf16.mxu0 %v2117_v12  ;;  %1610 = vmatprep.subr.bf16.mxu1 %v2119_v13  ;;  %v2149_v33 = vld [vmem:[%s3184_s1 + $0x10c] ss:$16 sps:$4 sm:$0xff]   ;;  %v2151_v34 = vld [vmem:[%s3184_s1 + $0x100] ss:$16 sps:$4 sm:$0xff]   ;;  %v2152_v35 = vld [vmem:[%s3184_s1 + $0x108] ss:$16 sps:$4 sm:$0xff]  }
   0xd   :  { %v2153_v36 = vld [vmem:[%s3184_s1 + $0x124] ss:$16 sps:$4 sm:$0xff]   ;;  %v2155_v37 = vld [vmem:[%s3184_s1 + $0x12c] ss:$16 sps:$4 sm:$0xff]   ;;  %v2157_v38 = vld [vmem:[%s3184_s1 + $0x120] ss:$16 sps:$4 sm:$0xff]  }
   0xe   :  { %v2158_v39 = vld [vmem:[%s3184_s1 + $0x128] ss:$16 sps:$4 sm:$0xff]   ;;  %v2159_v40 = vld [vmem:[%s3184_s1 + $0x144] ss:$16 sps:$4 sm:$0xff]   ;;  %v2161_v41 = vld [vmem:[%s3184_s1 + $0x14c] ss:$16 sps:$4 sm:$0xff]  }
   0xf   :  { %1439 = vmatpush1.bf16.msra.mxu0 %v2121_v14  ;;  %1611 = vmatpush1.bf16.msra.mxu1 %v2122_v15  ;;  %v2163_v42 = vld [vmem:[%s3184_s1 + $0x140] ss:$16 sps:$4 sm:$0xff]   ;;  %v2164_v43 = vld [vmem:[%s3184_s1 + $0x148] ss:$16 sps:$4 sm:$0xff]   ;;  %v2165_v44 = vld [vmem:[%s3184_s1 + $0x164] ss:$16 sps:$4 sm:$0xff]  }
  0x10   :  { %1440 = vmatprep.subr.bf16.mxu0 %v2123_v16  ;;  %1612 = vmatprep.subr.bf16.mxu1 %v2125_v17  ;;  %v2167_v45 = vld [vmem:[%s3184_s1 + $0x16c] ss:$16 sps:$4 sm:$0xff]   ;;  %v2169_v46 = vld [vmem:[%s3184_s1 + $0x160] ss:$16 sps:$4 sm:$0xff]   ;;  %v2170_v47 = vld [vmem:[%s3184_s1 + $0x168] ss:$16 sps:$4 sm:$0xff]  }
  0x11   :  { %v2197_v48 = vld [vmem:[%s3185_s0 + $0x4] ss:$28 sps:$4 sm:$0xff]   ;;  %v2173_v50 = vld [vmem:[%s3184_s1 + $0x18c] ss:$16 sps:$4 sm:$0xff]   ;;  %v2176_v52 = vld [vmem:[%s3184_s1 + $0x188] ss:$16 sps:$4 sm:$0xff]  }
  0x12   :  { %v2171_v49 = vld [vmem:[%s3184_s1 + $0x184] ss:$16 sps:$4 sm:$0xff]   ;;  %1464 = vmatprep.mubr.bf16.mxu0 %v2197_v48  ;;  %1636 = vmatprep.mubr.bf16.mxu1 %v2197_v48  ;;  %v2175_v51 = vld [vmem:[%s3184_s1 + $0x180] ss:$16 sps:$4 sm:$0xff]   ;;  %v2179_v54 = vld [vmem:[%s3184_s1 + $0x1ac] ss:$16 sps:$4 sm:$0xff]  }
  0x13   :  { %1441 = vmatpush1.bf16.msra.mxu0 %v2127_v18  ;;  %1613 = vmatpush1.bf16.msra.mxu1 %v2128_v19  ;;  %v2177_v53 = vld [vmem:[%s3184_s1 + $0x1a4] ss:$16 sps:$4 sm:$0xff]   ;;  %v2181_v55 = vld [vmem:[%s3184_s1 + $0x1a0] ss:$16 sps:$4 sm:$0xff]   ;;  %v2182_v56 = vld [vmem:[%s3184_s1 + $0x1a8] ss:$16 sps:$4 sm:$0xff]  }
  0x14   :  { %1442 = vmatprep.subr.bf16.mxu0 %v2129_v20  ;;  %1614 = vmatprep.subr.bf16.mxu1 %v2131_v21  ;;  %v2183_v57 = vld [vmem:[%s3184_s1 + $0x1c4] ss:$16 sps:$4 sm:$0xff]   ;;  %v2185_v58 = vld [vmem:[%s3184_s1 + $0x1cc] ss:$16 sps:$4 sm:$0xff]   ;;  %v2187_v59 = vld [vmem:[%s3184_s1 + $0x1c0] ss:$16 sps:$4 sm:$0xff]  }
  0x15   :  { %v2188_v60 = vld [vmem:[%s3184_s1 + $0x1c8] ss:$16 sps:$4 sm:$0xff]   ;;  %v2189_v61 = vld [vmem:[%s3184_s1 + $0x1e4] ss:$16 sps:$4 sm:$0xff]   ;;  %v2191_v62 = vld [vmem:[%s3184_s1 + $0x1ec] ss:$16 sps:$4 sm:$0xff]  }
  0x16   :  { %v2193_v63 = vld [vmem:[%s3184_s1 + $0x1e0] ss:$16 sps:$4 sm:$0xff]   ;;  %v2194_v0 = vld [vmem:[%s3184_s1 + $0x1e8] ss:$16 sps:$4 sm:$0xff]   ;;  %v2200_v1 = vld [vmem:[%s3184_s1 + $0x204] ss:$16 sps:$4 sm:$0xff]  }
  0x17   :  { %1443 = vmatpush1.bf16.msra.mxu0 %v2133_v22  ;;  %1615 = vmatpush1.bf16.msra.mxu1 %v2134_v23  ;;  %v2203_v2 = vld [vmem:[%s3184_s1 + $0x20c] ss:$16 sps:$4 sm:$0xff]   ;;  %v2198_v4 = vld [vmem:[%s3184_s1 + $0x200] ss:$16 sps:$4 sm:$0xff]   ;;  %v2201_v5 = vld [vmem:[%s3184_s1 + $0x208] ss:$16 sps:$4 sm:$0xff]  }
  0x18   :  { %1444 = vmatprep.subr.bf16.mxu0 %v2135_v24  ;;  %1616 = vmatprep.subr.bf16.mxu1 %v2137_v25  ;;  %v2195_v3 = vld [vmem:[%s3185_s0] ss:$28 sps:$4 sm:$0xff]   ;;  %v2206_v6 = vld [vmem:[%s3184_s1 + $0x224] ss:$16 sps:$4 sm:$0xff]   ;;  %v2207_v9 = vld [vmem:[%s3184_s1 + $0x228] ss:$16 sps:$4 sm:$0xff]  }
  0x19   :  { %v2209_v7 = vld [vmem:[%s3184_s1 + $0x22c] ss:$16 sps:$4 sm:$0xff]   ;;  %v2204_v8 = vld [vmem:[%s3184_s1 + $0x220] ss:$16 sps:$4 sm:$0xff]   ;;  %v2212_v10 = vld [vmem:[%s3184_s1 + $0x244] ss:$16 sps:$4 sm:$0xff]  }
  0x1a   :  { %v2215_v11 = vld [vmem:[%s3184_s1 + $0x24c] ss:$16 sps:$4 sm:$0xff]   ;;  %v2210_v12 = vld [vmem:[%s3184_s1 + $0x240] ss:$16 sps:$4 sm:$0xff]   ;;  %v2213_v13 = vld [vmem:[%s3184_s1 + $0x248] ss:$16 sps:$4 sm:$0xff]  }
  0x1b   :  { %1445 = vmatpush1.bf16.msra.mxu0 %v2139_v26  ;;  %1617 = vmatpush1.bf16.msra.mxu1 %v2140_v27  ;;  %v2218_v14 = vld [vmem:[%s3184_s1 + $0x264] ss:$16 sps:$4 sm:$0xff]   ;;  %v2221_v15 = vld [vmem:[%s3184_s1 + $0x26c] ss:$16 sps:$4 sm:$0xff]   ;;  %v2216_v16 = vld [vmem:[%s3184_s1 + $0x260] ss:$16 sps:$4 sm:$0xff]  }
  0x1c   :  { %1446 = vmatprep.subr.bf16.mxu0 %v2141_v28  ;;  %1618 = vmatprep.subr.bf16.mxu1 %v2143_v29  ;;  %v2219_v17 = vld [vmem:[%s3184_s1 + $0x268] ss:$16 sps:$4 sm:$0xff]   ;;  %v2224_v18 = vld [vmem:[%s3184_s1 + $0x284] ss:$16 sps:$4 sm:$0xff]   ;;  %v2227_v19 = vld [vmem:[%s3184_s1 + $0x28c] ss:$16 sps:$4 sm:$0xff]  }
  0x1d   :  { %v2222_v20 = vld [vmem:[%s3184_s1 + $0x280] ss:$16 sps:$4 sm:$0xff]   ;;  %v2225_v21 = vld [vmem:[%s3184_s1 + $0x288] ss:$16 sps:$4 sm:$0xff]   ;;  %v2230_v22 = vld [vmem:[%s3184_s1 + $0x2a4] ss:$16 sps:$4 sm:$0xff]  }
  0x1e   :  { %v2233_v23 = vld [vmem:[%s3184_s1 + $0x2ac] ss:$16 sps:$4 sm:$0xff]   ;;  %v2228_v24 = vld [vmem:[%s3184_s1 + $0x2a0] ss:$16 sps:$4 sm:$0xff]   ;;  %v2231_v25 = vld [vmem:[%s3184_s1 + $0x2a8] ss:$16 sps:$4 sm:$0xff]  }
  0x1f   :  { %1447 = vmatpush1.bf16.msra.mxu0 %v2145_v30  ;;  %1619 = vmatpush1.bf16.msra.mxu1 %v2146_v31  ;;  %v2236_v26 = vld [vmem:[%s3184_s1 + $0x2c4] ss:$16 sps:$4 sm:$0xff]   ;;  %v2239_v27 = vld [vmem:[%s3184_s1 + $0x2cc] ss:$16 sps:$4 sm:$0xff]   ;;  %v2234_v28 = vld [vmem:[%s3184_s1 + $0x2c0] ss:$16 sps:$4 sm:$0xff]  }
  0x20   :  { %1448 = vmatprep.subr.bf16.mxu0 %v2147_v32  ;;  %1620 = vmatprep.subr.bf16.mxu1 %v2149_v33  ;;  %v2237_v29 = vld [vmem:[%s3184_s1 + $0x2c8] ss:$16 sps:$4 sm:$0xff]   ;;  %v2242_v31 = vld [vmem:[%s3184_s1 + $0x2e4] ss:$16 sps:$4 sm:$0xff]   ;;  %v2245_v32 = vld [vmem:[%s3184_s1 + $0x2ec] ss:$16 sps:$4 sm:$0xff]  }
  0x21   :  { %v2296_v30 = vld [vmem:[%s3185_s0 + $0xc] ss:$28 sps:$4 sm:$0xff]   ;;  %v2240_v33 = vld [vmem:[%s3184_s1 + $0x2e0] ss:$16 sps:$4 sm:$0xff]  }
  0x22   :  { %v2269_v48 = vld [vmem:[%s3184_s1 + $0x36c] ss:$16 sps:$4 sm:$0xff]  }
  0x23   :  { %1449 = vmatpush1.bf16.msra.mxu0 %v2151_v34  ;;  %1621 = vmatpush1.bf16.msra.mxu1 %v2152_v35  ;;  %v2243_v34 = vld [vmem:[%s3184_s1 + $0x2e8] ss:$16 sps:$4 sm:$0xff]   ;;  %v2248_v35 = vld [vmem:[%s3184_s1 + $0x304] ss:$16 sps:$4 sm:$0xff]  }
  0x24   :  { %1450 = vmatprep.subr.bf16.mxu0 %v2153_v36  ;;  %1622 = vmatprep.subr.bf16.mxu1 %v2155_v37  ;;  %v2251_v36 = vld [vmem:[%s3184_s1 + $0x30c] ss:$16 sps:$4 sm:$0xff]   ;;  %v2246_v37 = vld [vmem:[%s3184_s1 + $0x300] ss:$16 sps:$4 sm:$0xff]  }
  0x27   :  { %1451 = vmatpush1.bf16.msra.mxu0 %v2157_v38  ;;  %1623 = vmatpush1.bf16.msra.mxu1 %v2158_v39  ;;  %v2249_v38 = vld [vmem:[%s3184_s1 + $0x308] ss:$16 sps:$4 sm:$0xff]   ;;  %v2254_v39 = vld [vmem:[%s3184_s1 + $0x324] ss:$16 sps:$4 sm:$0xff]  }
  0x28   :  { %1452 = vmatprep.subr.bf16.mxu0 %v2159_v40  ;;  %1624 = vmatprep.subr.bf16.mxu1 %v2161_v41  ;;  %v2257_v40 = vld [vmem:[%s3184_s1 + $0x32c] ss:$16 sps:$4 sm:$0xff]   ;;  %v2252_v41 = vld [vmem:[%s3184_s1 + $0x320] ss:$16 sps:$4 sm:$0xff]  }
  0x2b   :  { %1453 = vmatpush1.bf16.msra.mxu0 %v2163_v42  ;;  %1625 = vmatpush1.bf16.msra.mxu1 %v2164_v43  ;;  %v2255_v42 = vld [vmem:[%s3184_s1 + $0x328] ss:$16 sps:$4 sm:$0xff]   ;;  %v2260_v43 = vld [vmem:[%s3184_s1 + $0x344] ss:$16 sps:$4 sm:$0xff]  }
  0x2c   :  { %1454 = vmatprep.subr.bf16.mxu0 %v2165_v44  ;;  %1626 = vmatprep.subr.bf16.mxu1 %v2167_v45  ;;  %v2263_v44 = vld [vmem:[%s3184_s1 + $0x34c] ss:$16 sps:$4 sm:$0xff]   ;;  %v2258_v45 = vld [vmem:[%s3184_s1 + $0x340] ss:$16 sps:$4 sm:$0xff]  }
  0x2f   :  { %1455 = vmatpush1.bf16.msra.mxu0 %v2169_v46  ;;  %1627 = vmatpush1.bf16.msra.mxu1 %v2170_v47  ;;  %v2261_v46 = vld [vmem:[%s3184_s1 + $0x348] ss:$16 sps:$4 sm:$0xff]   ;;  %v2266_v47 = vld [vmem:[%s3184_s1 + $0x364] ss:$16 sps:$4 sm:$0xff]  }
  0x30   :  { %1456 = vmatprep.subr.bf16.mxu0 %v2171_v49  ;;  %1628 = vmatprep.subr.bf16.mxu1 %v2173_v50  ;;  %v2264_v49 = vld [vmem:[%s3184_s1 + $0x360] ss:$16 sps:$4 sm:$0xff]   ;;  %v2267_v50 = vld [vmem:[%s3184_s1 + $0x368] ss:$16 sps:$4 sm:$0xff]  }
  0x33   :  { %1457 = vmatpush1.bf16.msra.mxu0 %v2175_v51  ;;  %1629 = vmatpush1.bf16.msra.mxu1 %v2176_v52  ;;  %v2272_v51 = vld [vmem:[%s3184_s1 + $0x384] ss:$16 sps:$4 sm:$0xff]   ;;  %v2275_v52 = vld [vmem:[%s3184_s1 + $0x38c] ss:$16 sps:$4 sm:$0xff]  }
  0x34   :  { %1458 = vmatprep.subr.bf16.mxu0 %v2177_v53  ;;  %1630 = vmatprep.subr.bf16.mxu1 %v2179_v54  ;;  %v2270_v53 = vld [vmem:[%s3184_s1 + $0x380] ss:$16 sps:$4 sm:$0xff]   ;;  %v2273_v54 = vld [vmem:[%s3184_s1 + $0x388] ss:$16 sps:$4 sm:$0xff]  }
  0x37   :  { %1459 = vmatpush1.bf16.msra.mxu0 %v2181_v55  ;;  %1631 = vmatpush1.bf16.msra.mxu1 %v2182_v56  ;;  %v2278_v55 = vld [vmem:[%s3184_s1 + $0x3a4] ss:$16 sps:$4 sm:$0xff]   ;;  %v2281_v56 = vld [vmem:[%s3184_s1 + $0x3ac] ss:$16 sps:$4 sm:$0xff]  }
  0x38   :  { %1460 = vmatprep.subr.bf16.mxu0 %v2183_v57  ;;  %1632 = vmatprep.subr.bf16.mxu1 %v2185_v58  ;;  %v2276_v57 = vld [vmem:[%s3184_s1 + $0x3a0] ss:$16 sps:$4 sm:$0xff]   ;;  %v2279_v58 = vld [vmem:[%s3184_s1 + $0x3a8] ss:$16 sps:$4 sm:$0xff]  }
  0x3b   :  { %1461 = vmatpush1.bf16.msra.mxu0 %v2187_v59  ;;  %1633 = vmatpush1.bf16.msra.mxu1 %v2188_v60  ;;  %v2284_v59 = vld [vmem:[%s3184_s1 + $0x3c4] ss:$16 sps:$4 sm:$0xff]   ;;  %v2287_v60 = vld [vmem:[%s3184_s1 + $0x3cc] ss:$16 sps:$4 sm:$0xff]  }
  0x3c   :  { %1462 = vmatprep.subr.bf16.mxu0 %v2189_v61  ;;  %1634 = vmatprep.subr.bf16.mxu1 %v2191_v62  ;;  %v2282_v61 = vld [vmem:[%s3184_s1 + $0x3c0] ss:$16 sps:$4 sm:$0xff]   ;;  %v2285_v62 = vld [vmem:[%s3184_s1 + $0x3c8] ss:$16 sps:$4 sm:$0xff]  }
  0x3f   :  { %1463 = vmatpush1.bf16.msra.mxu0 %v2193_v63  ;;  %1635 = vmatpush1.bf16.msra.mxu1 %v2194_v0  ;;  %v2290_v63 = vld [vmem:[%s3184_s1 + $0x3e4] ss:$16 sps:$4 sm:$0xff]   ;;  %v2293_v0 = vld [vmem:[%s3184_s1 + $0x3ec] ss:$16 sps:$4 sm:$0xff]  }
  0x40   :  { %1475 = vmatprep.subr.bf16.mxu0 %v2200_v1  ;;  %1647 = vmatprep.subr.bf16.mxu1 %v2203_v2  ;;  %v2288_v1 = vld [vmem:[%s3184_s1 + $0x3e0] ss:$16 sps:$4 sm:$0xff]   ;;  %v2291_v2 = vld [vmem:[%s3184_s1 + $0x3e8] ss:$16 sps:$4 sm:$0xff]  }
  0x42   :  { %1465 = vmatmul.mubr.bf16.vlgmr.msra.gmra.mrb[0].mxu0 %v2195_v3  ;;  %1637 = vmatmul.mubr.bf16.vlgmr.msra.gmra.mrb[0].mxu1 %v2195_v3  ;;  %v2299_v3 = vld [vmem:[%s3184_s1 + $0x404] ss:$16 sps:$4 sm:$0xff]  }
  0x43   :  { %1476 = vmatpush1.bf16.msra.mxu0 %v2198_v4  ;;  %1648 = vmatpush1.bf16.msra.mxu1 %v2201_v5  ;;  %v2302_v4 = vld [vmem:[%s3184_s1 + $0x40c] ss:$16 sps:$4 sm:$0xff]   ;;  %v2294_v5 = vld [vmem:[%s3185_s0 + $0x8] ss:$28 sps:$4 sm:$0xff]  }
  0x44   :  { %1477 = vmatprep.subr.bf16.mxu0 %v2206_v6  ;;  %1649 = vmatprep.subr.bf16.mxu1 %v2209_v7  ;;  %v2297_v6 = vld [vmem:[%s3184_s1 + $0x400] ss:$16 sps:$4 sm:$0xff]   ;;  %v2300_v7 = vld [vmem:[%s3184_s1 + $0x408] ss:$16 sps:$4 sm:$0xff]  }
  0x45   :  { %1507 = vmatprep.mubr.bf16.mxu0 %v2296_v30  ;;  %1679 = vmatprep.mubr.bf16.mxu1 %v2296_v30  ;;  %v2338_v30 = vld [vmem:[%s3184_s1 + $0x4cc] ss:$16 sps:$4 sm:$0xff]  }
  0x47   :  { %1478 = vmatpush1.bf16.msra.mxu0 %v2204_v8  ;;  %1650 = vmatpush1.bf16.msra.mxu1 %v2207_v9  ;;  %v2305_v8 = vld [vmem:[%s3184_s1 + $0x424] ss:$16 sps:$4 sm:$0xff]   ;;  %v2308_v9 = vld [vmem:[%s3184_s1 + $0x42c] ss:$16 sps:$4 sm:$0xff]  }
  0x48   :  { %1479 = vmatprep.subr.bf16.mxu0 %v2212_v10  ;;  %1651 = vmatprep.subr.bf16.mxu1 %v2215_v11  ;;  %v2303_v10 = vld [vmem:[%s3184_s1 + $0x420] ss:$16 sps:$4 sm:$0xff]   ;;  %v2306_v11 = vld [vmem:[%s3184_s1 + $0x428] ss:$16 sps:$4 sm:$0xff]  }
  0x4b   :  { %1480 = vmatpush1.bf16.msra.mxu0 %v2210_v12  ;;  %1652 = vmatpush1.bf16.msra.mxu1 %v2213_v13  ;;  %v2395_v12 = vld [vmem:[%s3185_s0 + $0x14] ss:$28 sps:$4 sm:$0xff]  }
  0x4c   :  { %1481 = vmatprep.subr.bf16.mxu0 %v2218_v14  ;;  %1653 = vmatprep.subr.bf16.mxu1 %v2221_v15  ;;  %v2311_v13 = vld [vmem:[%s3184_s1 + $0x444] ss:$16 sps:$4 sm:$0xff]   ;;  %v2314_v14 = vld [vmem:[%s3184_s1 + $0x44c] ss:$16 sps:$4 sm:$0xff]   ;;  %v2309_v15 = vld [vmem:[%s3184_s1 + $0x440] ss:$16 sps:$4 sm:$0xff]  }
  0x4f   :  { %1482 = vmatpush1.bf16.msra.mxu0 %v2216_v16  ;;  %1654 = vmatpush1.bf16.msra.mxu1 %v2219_v17  ;;  %v2312_v16 = vld [vmem:[%s3184_s1 + $0x448] ss:$16 sps:$4 sm:$0xff]   ;;  %v2317_v17 = vld [vmem:[%s3184_s1 + $0x464] ss:$16 sps:$4 sm:$0xff]  }
  0x50   :  { %1483 = vmatprep.subr.bf16.mxu0 %v2224_v18  ;;  %1655 = vmatprep.subr.bf16.mxu1 %v2227_v19  ;;  %v2320_v18 = vld [vmem:[%s3184_s1 + $0x46c] ss:$16 sps:$4 sm:$0xff]   ;;  %v2315_v19 = vld [vmem:[%s3184_s1 + $0x460] ss:$16 sps:$4 sm:$0xff]  }
  0x53   :  { %1484 = vmatpush1.bf16.msra.mxu0 %v2222_v20  ;;  %1656 = vmatpush1.bf16.msra.mxu1 %v2225_v21  ;;  %v2318_v20 = vld [vmem:[%s3184_s1 + $0x468] ss:$16 sps:$4 sm:$0xff]   ;;  %v2323_v21 = vld [vmem:[%s3184_s1 + $0x484] ss:$16 sps:$4 sm:$0xff]  }
  0x54   :  { %1485 = vmatprep.subr.bf16.mxu0 %v2230_v22  ;;  %1657 = vmatprep.subr.bf16.mxu1 %v2233_v23  ;;  %v2326_v22 = vld [vmem:[%s3184_s1 + $0x48c] ss:$16 sps:$4 sm:$0xff]   ;;  %v2321_v23 = vld [vmem:[%s3184_s1 + $0x480] ss:$16 sps:$4 sm:$0xff]  }
  0x57   :  { %1486 = vmatpush1.bf16.msra.mxu0 %v2228_v24  ;;  %1658 = vmatpush1.bf16.msra.mxu1 %v2231_v25  ;;  %v2324_v24 = vld [vmem:[%s3184_s1 + $0x488] ss:$16 sps:$4 sm:$0xff]   ;;  %v2329_v25 = vld [vmem:[%s3184_s1 + $0x4a4] ss:$16 sps:$4 sm:$0xff]  }
  0x58   :  { %1487 = vmatprep.subr.bf16.mxu0 %v2236_v26  ;;  %1659 = vmatprep.subr.bf16.mxu1 %v2239_v27  ;;  %v2332_v26 = vld [vmem:[%s3184_s1 + $0x4ac] ss:$16 sps:$4 sm:$0xff]   ;;  %v2327_v27 = vld [vmem:[%s3184_s1 + $0x4a0] ss:$16 sps:$4 sm:$0xff]  }
  0x5b   :  { %1488 = vmatpush1.bf16.msra.mxu0 %v2234_v28  ;;  %1660 = vmatpush1.bf16.msra.mxu1 %v2237_v29  ;;  %v2330_v28 = vld [vmem:[%s3184_s1 + $0x4a8] ss:$16 sps:$4 sm:$0xff]   ;;  %v2335_v29 = vld [vmem:[%s3184_s1 + $0x4c4] ss:$16 sps:$4 sm:$0xff]  }
  0x5c   :  { %1489 = vmatprep.subr.bf16.mxu0 %v2242_v31  ;;  %1661 = vmatprep.subr.bf16.mxu1 %v2245_v32  ;;  %v2333_v31 = vld [vmem:[%s3184_s1 + $0x4c0] ss:$16 sps:$4 sm:$0xff]   ;;  %v2336_v32 = vld [vmem:[%s3184_s1 + $0x4c8] ss:$16 sps:$4 sm:$0xff]  }
  0x5f   :  { %1490 = vmatpush1.bf16.msra.mxu0 %v2240_v33  ;;  %1662 = vmatpush1.bf16.msra.mxu1 %v2243_v34  ;;  %v2341_v33 = vld [vmem:[%s3184_s1 + $0x4e4] ss:$16 sps:$4 sm:$0xff]   ;;  %v2344_v34 = vld [vmem:[%s3184_s1 + $0x4ec] ss:$16 sps:$4 sm:$0xff]  }
  0x60   :  { %1491 = vmatprep.subr.bf16.mxu0 %v2248_v35  ;;  %1663 = vmatprep.subr.bf16.mxu1 %v2251_v36  ;;  %v2339_v35 = vld [vmem:[%s3184_s1 + $0x4e0] ss:$16 sps:$4 sm:$0xff]   ;;  %v2342_v36 = vld [vmem:[%s3184_s1 + $0x4e8] ss:$16 sps:$4 sm:$0xff]  }
  0x63   :  { %1492 = vmatpush1.bf16.msra.mxu0 %v2246_v37  ;;  %1664 = vmatpush1.bf16.msra.mxu1 %v2249_v38  ;;  %v2347_v37 = vld [vmem:[%s3184_s1 + $0x504] ss:$16 sps:$4 sm:$0xff]   ;;  %v2350_v38 = vld [vmem:[%s3184_s1 + $0x50c] ss:$16 sps:$4 sm:$0xff]  }
  0x64   :  { %1493 = vmatprep.subr.bf16.mxu0 %v2254_v39  ;;  %1665 = vmatprep.subr.bf16.mxu1 %v2257_v40  ;;  %v2345_v39 = vld [vmem:[%s3184_s1 + $0x500] ss:$16 sps:$4 sm:$0xff]   ;;  %v2348_v40 = vld [vmem:[%s3184_s1 + $0x508] ss:$16 sps:$4 sm:$0xff]  }
  0x67   :  { %1494 = vmatpush1.bf16.msra.mxu0 %v2252_v41  ;;  %1666 = vmatpush1.bf16.msra.mxu1 %v2255_v42  ;;  %v2353_v41 = vld [vmem:[%s3184_s1 + $0x524] ss:$16 sps:$4 sm:$0xff]   ;;  %v2356_v42 = vld [vmem:[%s3184_s1 + $0x52c] ss:$16 sps:$4 sm:$0xff]  }
  0x68   :  { %1495 = vmatprep.subr.bf16.mxu0 %v2260_v43  ;;  %1667 = vmatprep.subr.bf16.mxu1 %v2263_v44  ;;  %v2351_v43 = vld [vmem:[%s3184_s1 + $0x520] ss:$16 sps:$4 sm:$0xff]   ;;  %v2354_v44 = vld [vmem:[%s3184_s1 + $0x528] ss:$16 sps:$4 sm:$0xff]  }
  0x6b   :  { %1496 = vmatpush1.bf16.msra.mxu0 %v2258_v45  ;;  %1668 = vmatpush1.bf16.msra.mxu1 %v2261_v46  ;;  %v2359_v45 = vld [vmem:[%s3184_s1 + $0x544] ss:$16 sps:$4 sm:$0xff]   ;;  %v2362_v46 = vld [vmem:[%s3184_s1 + $0x54c] ss:$16 sps:$4 sm:$0xff]  }
  0x6c   :  { %1497 = vmatprep.subr.bf16.mxu0 %v2266_v47  ;;  %1669 = vmatprep.subr.bf16.mxu1 %v2269_v48  ;;  %v2357_v47 = vld [vmem:[%s3184_s1 + $0x540] ss:$16 sps:$4 sm:$0xff]   ;;  %v2360_v48 = vld [vmem:[%s3184_s1 + $0x548] ss:$16 sps:$4 sm:$0xff]  }
  0x6f   :  { %1498 = vmatpush1.bf16.msra.mxu0 %v2264_v49  ;;  %1670 = vmatpush1.bf16.msra.mxu1 %v2267_v50  ;;  %v2365_v49 = vld [vmem:[%s3184_s1 + $0x564] ss:$16 sps:$4 sm:$0xff]   ;;  %v2368_v50 = vld [vmem:[%s3184_s1 + $0x56c] ss:$16 sps:$4 sm:$0xff]  }
  0x70   :  { %1499 = vmatprep.subr.bf16.mxu0 %v2272_v51  ;;  %1671 = vmatprep.subr.bf16.mxu1 %v2275_v52  ;;  %v2363_v51 = vld [vmem:[%s3184_s1 + $0x560] ss:$16 sps:$4 sm:$0xff]   ;;  %v2366_v52 = vld [vmem:[%s3184_s1 + $0x568] ss:$16 sps:$4 sm:$0xff]  }
  0x73   :  { %1500 = vmatpush1.bf16.msra.mxu0 %v2270_v53  ;;  %1672 = vmatpush1.bf16.msra.mxu1 %v2273_v54  ;;  %v2371_v53 = vld [vmem:[%s3184_s1 + $0x584] ss:$16 sps:$4 sm:$0xff]   ;;  %v2374_v54 = vld [vmem:[%s3184_s1 + $0x58c] ss:$16 sps:$4 sm:$0xff]  }
  0x74   :  { %1501 = vmatprep.subr.bf16.mxu0 %v2278_v55  ;;  %1673 = vmatprep.subr.bf16.mxu1 %v2281_v56  ;;  %v2369_v55 = vld [vmem:[%s3184_s1 + $0x580] ss:$16 sps:$4 sm:$0xff]   ;;  %v2372_v56 = vld [vmem:[%s3184_s1 + $0x588] ss:$16 sps:$4 sm:$0xff]  }
  0x77   :  { %1502 = vmatpush1.bf16.msra.mxu0 %v2276_v57  ;;  %1674 = vmatpush1.bf16.msra.mxu1 %v2279_v58  ;;  %v2377_v57 = vld [vmem:[%s3184_s1 + $0x5a4] ss:$16 sps:$4 sm:$0xff]   ;;  %v2380_v58 = vld [vmem:[%s3184_s1 + $0x5ac] ss:$16 sps:$4 sm:$0xff]  }
  0x78   :  { %1503 = vmatprep.subr.bf16.mxu0 %v2284_v59  ;;  %1675 = vmatprep.subr.bf16.mxu1 %v2287_v60  ;;  %v2375_v59 = vld [vmem:[%s3184_s1 + $0x5a0] ss:$16 sps:$4 sm:$0xff]   ;;  %v2378_v60 = vld [vmem:[%s3184_s1 + $0x5a8] ss:$16 sps:$4 sm:$0xff]  }
  0x7b   :  { %1504 = vmatpush1.bf16.msra.mxu0 %v2282_v61  ;;  %1676 = vmatpush1.bf16.msra.mxu1 %v2285_v62  ;;  %v2383_v61 = vld [vmem:[%s3184_s1 + $0x5c4] ss:$16 sps:$4 sm:$0xff]   ;;  %v2386_v62 = vld [vmem:[%s3184_s1 + $0x5cc] ss:$16 sps:$4 sm:$0xff]  }
  0x7c   :  { %1505 = vmatprep.subr.bf16.mxu0 %v2290_v63  ;;  %1677 = vmatprep.subr.bf16.mxu1 %v2293_v0  ;;  %v2381_v63 = vld [vmem:[%s3184_s1 + $0x5c0] ss:$16 sps:$4 sm:$0xff]   ;;  %v2384_v0 = vld [vmem:[%s3184_s1 + $0x5c8] ss:$16 sps:$4 sm:$0xff]  }
  0x7f   :  { %1506 = vmatpush1.bf16.msra.mxu0 %v2288_v1  ;;  %1678 = vmatpush1.bf16.msra.mxu1 %v2291_v2  ;;  %v2389_v1 = vld [vmem:[%s3184_s1 + $0x5e4] ss:$16 sps:$4 sm:$0xff]   ;;  %v2392_v2 = vld [vmem:[%s3184_s1 + $0x5ec] ss:$16 sps:$4 sm:$0xff]  }
  0x80   :  { %1518 = vmatprep.subr.bf16.mxu0 %v2299_v3  ;;  %1690 = vmatprep.subr.bf16.mxu1 %v2302_v4  ;;  %v2387_v3 = vld [vmem:[%s3184_s1 + $0x5e0] ss:$16 sps:$4 sm:$0xff]   ;;  %v2390_v4 = vld [vmem:[%s3184_s1 + $0x5e8] ss:$16 sps:$4 sm:$0xff]  }
  0x82   :  { %1508 = vmatmul.mubr.bf16.vlgmr.msra.gmra.mrb[0].mxu0 %v2294_v5  ;;  %1680 = vmatmul.mubr.bf16.vlgmr.msra.gmra.mrb[0].mxu1 %v2294_v5  ;;  %v2398_v5 = vld [vmem:[%s3184_s1 + $0x604] ss:$16 sps:$4 sm:$0xff]  }
  0x83   :  { %1519 = vmatpush1.bf16.msra.mxu0 %v2297_v6  ;;  %1691 = vmatpush1.bf16.msra.mxu1 %v2300_v7  ;;  %v2401_v6 = vld [vmem:[%s3184_s1 + $0x60c] ss:$16 sps:$4 sm:$0xff]  }
  0x84   :  { %1520 = vmatprep.subr.bf16.mxu0 %v2305_v8  ;;  %1692 = vmatprep.subr.bf16.mxu1 %v2308_v9  ;;  %v2393_v7 = vld [vmem:[%s3185_s0 + $0x10] ss:$28 sps:$4 sm:$0xff]   ;;  %v2399_v9 = vld [vmem:[%s3184_s1 + $0x608] ss:$16 sps:$4 sm:$0xff]  }
  0x85   :  { %1550 = vmatprep.mubr.bf16.mxu0 %v2395_v12  ;;  %1722 = vmatprep.mubr.bf16.mxu1 %v2395_v12  ;;  %v2396_v8 = vld [vmem:[%s3184_s1 + $0x600] ss:$16 sps:$4 sm:$0xff]  }
  0x86   :  { %v2402_v12 = vld [vmem:[%s3184_s1 + $0x620] ss:$16 sps:$4 sm:$0xff]  }
  0x87   :  { %1521 = vmatpush1.bf16.msra.mxu0 %v2303_v10  ;;  %1693 = vmatpush1.bf16.msra.mxu1 %v2306_v11  ;;  %v2404_v10 = vld [vmem:[%s3184_s1 + $0x624] ss:$16 sps:$4 sm:$0xff]   ;;  %v2407_v11 = vld [vmem:[%s3184_s1 + $0x62c] ss:$16 sps:$4 sm:$0xff]  }
  0x88   :  { %1522 = vmatprep.subr.bf16.mxu0 %v2311_v13  ;;  %1694 = vmatprep.subr.bf16.mxu1 %v2314_v14  ;;  %v2405_v13 = vld [vmem:[%s3184_s1 + $0x628] ss:$16 sps:$4 sm:$0xff]   ;;  %v2410_v14 = vld [vmem:[%s3184_s1 + $0x644] ss:$16 sps:$4 sm:$0xff]  }
  0x8b   :  { %1523 = vmatpush1.bf16.msra.mxu0 %v2309_v15  ;;  %1695 = vmatpush1.bf16.msra.mxu1 %v2312_v16  ;;  %v2413_v15 = vld [vmem:[%s3184_s1 + $0x64c] ss:$16 sps:$4 sm:$0xff]   ;;  %v2445_v16 = vmov 0  }
  0x8c   :  { %1524 = vmatprep.subr.bf16.mxu0 %v2317_v17  ;;  %1696 = vmatprep.subr.bf16.mxu1 %v2320_v18  ;;  %v2408_v17 = vld [vmem:[%s3184_s1 + $0x640] ss:$16 sps:$4 sm:$0xff]   ;;  %v2411_v18 = vld [vmem:[%s3184_s1 + $0x648] ss:$16 sps:$4 sm:$0xff]  }
  0x8f   :  { %1525 = vmatpush1.bf16.msra.mxu0 %v2315_v19  ;;  %1697 = vmatpush1.bf16.msra.mxu1 %v2318_v20  ;;  %v2416_v19 = vld [vmem:[%s3184_s1 + $0x664] ss:$16 sps:$4 sm:$0xff]   ;;  %v2419_v20 = vld [vmem:[%s3184_s1 + $0x66c] ss:$16 sps:$4 sm:$0xff]  }
  0x90   :  { %1526 = vmatprep.subr.bf16.mxu0 %v2323_v21  ;;  %1698 = vmatprep.subr.bf16.mxu1 %v2326_v22  ;;  %v2414_v21 = vld [vmem:[%s3184_s1 + $0x660] ss:$16 sps:$4 sm:$0xff]   ;;  %v2417_v22 = vld [vmem:[%s3184_s1 + $0x668] ss:$16 sps:$4 sm:$0xff]  }
  0x93   :  { %1527 = vmatpush1.bf16.msra.mxu0 %v2321_v23  ;;  %1699 = vmatpush1.bf16.msra.mxu1 %v2324_v24  ;;  %v2422_v23 = vld [vmem:[%s3184_s1 + $0x684] ss:$16 sps:$4 sm:$0xff]   ;;  %v2425_v24 = vld [vmem:[%s3184_s1 + $0x68c] ss:$16 sps:$4 sm:$0xff]  }
  0x94   :  { %1528 = vmatprep.subr.bf16.mxu0 %v2329_v25  ;;  %1700 = vmatprep.subr.bf16.mxu1 %v2332_v26  ;;  %v2420_v25 = vld [vmem:[%s3184_s1 + $0x680] ss:$16 sps:$4 sm:$0xff]   ;;  %v2423_v26 = vld [vmem:[%s3184_s1 + $0x688] ss:$16 sps:$4 sm:$0xff]  }
  0x97   :  { %1529 = vmatpush1.bf16.msra.mxu0 %v2327_v27  ;;  %1701 = vmatpush1.bf16.msra.mxu1 %v2330_v28  ;;  %v2428_v27 = vld [vmem:[%s3184_s1 + $0x6a4] ss:$16 sps:$4 sm:$0xff]   ;;  %v2431_v28 = vld [vmem:[%s3184_s1 + $0x6ac] ss:$16 sps:$4 sm:$0xff]  }
  0x98   :  { %1530 = vmatprep.subr.bf16.mxu0 %v2335_v29  ;;  %1702 = vmatprep.subr.bf16.mxu1 %v2338_v30  ;;  %v2426_v29 = vld [vmem:[%s3184_s1 + $0x6a0] ss:$16 sps:$4 sm:$0xff]   ;;  %v2429_v30 = vld [vmem:[%s3184_s1 + $0x6a8] ss:$16 sps:$4 sm:$0xff]  }
  0x9b   :  { %1531 = vmatpush1.bf16.msra.mxu0 %v2333_v31  ;;  %1703 = vmatpush1.bf16.msra.mxu1 %v2336_v32  ;;  %v2434_v31 = vld [vmem:[%s3184_s1 + $0x6c4] ss:$16 sps:$4 sm:$0xff]   ;;  %v2437_v32 = vld [vmem:[%s3184_s1 + $0x6cc] ss:$16 sps:$4 sm:$0xff]  }
  0x9c   :  { %1532 = vmatprep.subr.bf16.mxu0 %v2341_v33  ;;  %1704 = vmatprep.subr.bf16.mxu1 %v2344_v34  ;;  %v2432_v33 = vld [vmem:[%s3184_s1 + $0x6c0] ss:$16 sps:$4 sm:$0xff]   ;;  %v2435_v34 = vld [vmem:[%s3184_s1 + $0x6c8] ss:$16 sps:$4 sm:$0xff]  }
  0x9f   :  { %1533 = vmatpush1.bf16.msra.mxu0 %v2339_v35  ;;  %1705 = vmatpush1.bf16.msra.mxu1 %v2342_v36  ;;  %v2440_v35 = vld [vmem:[%s3184_s1 + $0x6e4] ss:$16 sps:$4 sm:$0xff]   ;;  %v2443_v36 = vld [vmem:[%s3184_s1 + $0x6ec] ss:$16 sps:$4 sm:$0xff]  }
  0xa0   :  { %1534 = vmatprep.subr.bf16.mxu0 %v2347_v37  ;;  %1706 = vmatprep.subr.bf16.mxu1 %v2350_v38  ;;  %v2438_v37 = vld [vmem:[%s3184_s1 + $0x6e0] ss:$16 sps:$4 sm:$0xff]   ;;  %v2441_v38 = vld [vmem:[%s3184_s1 + $0x6e8] ss:$16 sps:$4 sm:$0xff]  }
  0xa3   :  { %1535 = vmatpush1.bf16.msra.mxu0 %v2345_v39  ;;  %1707 = vmatpush1.bf16.msra.mxu1 %v2348_v40  ;;  %v2444_v39 = vld [vmem:[%s3185_s0 + $0x18] ss:$28 sps:$4 sm:$0xff]   ;;  %v256_v40 = vlaneseq }
  0xa4   :  { %1536 = vmatprep.subr.bf16.mxu0 %v2353_v41  ;;  %1708 = vmatprep.subr.bf16.mxu1 %v2356_v42 }
  0xa5   :  { %v257_v41 = vshrl.u32 %v256_v40, 7 }
  0xa7   :  { %1537 = vmatpush1.bf16.msra.mxu0 %v2351_v43  ;;  %1709 = vmatpush1.bf16.msra.mxu1 %v2354_v44  ;;  %v258_v42 = vsub.s32 0, %v257_v41  ;;  %v266_v43 = vsub.s32 2, %v257_v41  ;;  %v254_v44 = vld [vmem:[%s3186_s2] sm:$0xf] }
  0xa8   :  { %1538 = vmatprep.subr.bf16.mxu0 %v2359_v45  ;;  %1710 = vmatprep.subr.bf16.mxu1 %v2362_v46  ;;  %v262_v45 = vsub.s32 1, %v257_v41  ;;  %v270_v46 = vsub.s32 3, %v257_v41 }
  0xab   :  { %1539 = vmatpush1.bf16.msra.mxu0 %v2357_v47  ;;  %1711 = vmatpush1.bf16.msra.mxu1 %v2360_v48  ;;  %v259_v47 = vrot.slane %v254_v44, %v258_v42  ;;  %v267_v48 = vrot.slane %v254_v44, %v266_v43 }
  0xac   :  { %1540 = vmatprep.subr.bf16.mxu0 %v2365_v49  ;;  %1712 = vmatprep.subr.bf16.mxu1 %v2368_v50  ;;  %v1784_v49 = vld [vmem:[%s3187_s3] sm:$0xf]  ;;  %v263_v50 = vrot.slane %v254_v44, %v262_v45 }
  0xaf   :  { %1541 = vmatpush1.bf16.msra.mxu0 %v2363_v51  ;;  %1713 = vmatpush1.bf16.msra.mxu1 %v2366_v52  ;;  %v271_v51 = vrot.slane %v254_v44, %v270_v46 }
  0xb0   :  { %1542 = vmatprep.subr.bf16.mxu0 %v2371_v53  ;;  %1714 = vmatprep.subr.bf16.mxu1 %v2374_v54 }
  0xb3   :  { %1543 = vmatpush1.bf16.msra.mxu0 %v2369_v55  ;;  %1715 = vmatpush1.bf16.msra.mxu1 %v2372_v56  ;;  %v1789_v55 = vrot.slane %v1784_v49, %v258_v42 }
  0xb4   :  { %1544 = vmatprep.subr.bf16.mxu0 %v2377_v57  ;;  %1716 = vmatprep.subr.bf16.mxu1 %v2380_v58 }
  0xb7   :  { %1545 = vmatpush1.bf16.msra.mxu0 %v2375_v59  ;;  %1717 = vmatpush1.bf16.msra.mxu1 %v2378_v60  ;;  %v1793_v60 = vrot.slane %v1784_v49, %v262_v45 }
  0xb8   :  { %1546 = vmatprep.subr.bf16.mxu0 %v2383_v61  ;;  %1718 = vmatprep.subr.bf16.mxu1 %v2386_v62 }
  0xbb   :  { %1547 = vmatpush1.bf16.msra.mxu0 %v2381_v63  ;;  %1719 = vmatpush1.bf16.msra.mxu1 %v2384_v0 }
  0xbc   :  { %1548 = vmatprep.subr.bf16.mxu0 %v2389_v1  ;;  %1720 = vmatprep.subr.bf16.mxu1 %v2392_v2  ;;  %v1797_v1 = vrot.slane %v1784_v49, %v266_v43 }
  0xbf   :  { %1549 = vmatpush1.bf16.msra.mxu0 %v2387_v3  ;;  %1721 = vmatpush1.bf16.msra.mxu1 %v2390_v4 }
  0xc0   :  { %1561 = vmatprep.subr.bf16.mxu0 %v2398_v5  ;;  %1733 = vmatprep.subr.bf16.mxu1 %v2401_v6 }
  0xc2   :  { %1551 = vmatmul.mubr.bf16.vlgmr.msra.gmra.mrb[0].mxu0 %v2393_v7  ;;  %1723 = vmatmul.mubr.bf16.vlgmr.msra.gmra.mrb[0].mxu1 %v2393_v7 }
  0xc3   :  { %1562 = vmatpush1.bf16.msra.mxu0 %v2396_v8  ;;  %1734 = vmatpush1.bf16.msra.mxu1 %v2399_v9 }
  0xc4   :  { %1563 = vmatprep.subr.bf16.mxu0 %v2404_v10  ;;  %1735 = vmatprep.subr.bf16.mxu1 %v2407_v11 }
  0xc5   :  { %1593 = vmatprep.mubr.bf16.mxu0 %v2445_v16  ;;  %1765 = vmatprep.mubr.bf16.mxu1 %v2445_v16 }
  0xc7   :  { %1564 = vmatpush1.bf16.msra.mxu0 %v2402_v12  ;;  %1736 = vmatpush1.bf16.msra.mxu1 %v2405_v13  ;;  %v1801_v12 = vrot.slane %v1784_v49, %v270_v46 }
  0xc8   :  { %1565 = vmatprep.subr.bf16.mxu0 %v2410_v14  ;;  %1737 = vmatprep.subr.bf16.mxu1 %v2413_v15 }
  0xcb   :  { %1566 = vmatpush1.bf16.msra.mxu0 %v2408_v17  ;;  %1738 = vmatpush1.bf16.msra.mxu1 %v2411_v18 }
  0xcc   :  { %1567 = vmatprep.subr.bf16.mxu0 %v2416_v19  ;;  %1739 = vmatprep.subr.bf16.mxu1 %v2419_v20 }
  0xcf   :  { %1568 = vmatpush1.bf16.msra.mxu0 %v2414_v21  ;;  %1740 = vmatpush1.bf16.msra.mxu1 %v2417_v22 }
  0xd0   :  { %1569 = vmatprep.subr.bf16.mxu0 %v2422_v23  ;;  %1741 = vmatprep.subr.bf16.mxu1 %v2425_v24 }
  0xd3   :  { %1570 = vmatpush1.bf16.msra.mxu0 %v2420_v25  ;;  %1742 = vmatpush1.bf16.msra.mxu1 %v2423_v26 }
  0xd4   :  { %1571 = vmatprep.subr.bf16.mxu0 %v2428_v27  ;;  %1743 = vmatprep.subr.bf16.mxu1 %v2431_v28 }
  0xd7   :  { %1572 = vmatpush1.bf16.msra.mxu0 %v2426_v29  ;;  %1744 = vmatpush1.bf16.msra.mxu1 %v2429_v30  ;;  %v1825_v30 = vstv %s3188_s4 }
  0xd8   :  { %1573 = vmatprep.subr.bf16.mxu0 %v2434_v31  ;;  %1745 = vmatprep.subr.bf16.mxu1 %v2437_v32 }
  0xdb   :  { %1574 = vmatpush1.bf16.msra.mxu0 %v2432_v33  ;;  %1746 = vmatpush1.bf16.msra.mxu1 %v2435_v34 }
  0xdc   :  { %1575 = vmatprep.subr.bf16.mxu0 %v2440_v35  ;;  %1747 = vmatprep.subr.bf16.mxu1 %v2443_v36 }
  0xdf   :  { %1576 = vmatpush1.bf16.msra.mxu0 %v2438_v37  ;;  %1748 = vmatpush1.bf16.msra.mxu1 %v2441_v38 }
  0xe2   :  { %1594 = vmatmul.mubr.bf16.vlgmr.msra.gmra.mrb[0].mxu0 %v2444_v39  ;;  %1766 = vmatmul.mubr.bf16.vlgmr.msra.gmra.mrb[0].mxu1 %v2444_v39 }
 0x1b5   :  { %v1595_v52 = vpop.f32.mrb[0].mxu0  ;;  %v1767_v53 = vpop.f32.mrb[0].mxu1 }
 0x1b6   :  { %v2066_v54 = vadd.f32 %v1595_v52, %v259_v47  ;;  %v2070_v56 = vadd.f32 %v1767_v53, %v267_v48  ;;  %v1597_v57 = vpop.f32.mrb[1].mxu0  ;;  %v1769_v58 = vpop.f32.mrb[1].mxu1 }
 0x1b7   :  { %v2067_v59 = vadd.f32 %v1597_v57, %v263_v50  ;;  %v2071_v61 = vadd.f32 %v1769_v58, %v271_v51  ;;  %v1599_v62 = vpop.f32.mrb[2].mxu0  ;;  %v1771_v63 = vpop.f32.mrb[2].mxu1 }
 0x1b8   :  { %v1776_v0 = vmax.f32 %v2066_v54, 0.0  ;;  %v2068_v2 = vadd.f32 %v1599_v62, %v259_v47  ;;  %v2072_v3 = vadd.f32 %v1771_v63, %v267_v48  ;;  %v1601_v4 = vpop.f32.mrb[3].mxu0  ;;  %v1773_v5 = vpop.f32.mrb[3].mxu1  ;;  %v1778_v6 = vmax.f32 %v2070_v56, 0.0 }
 0x1b9   :  { %v1777_v7 = vmax.f32 %v2067_v59, 0.0  ;;  %v2069_v8 = vadd.f32 %v1601_v4, %v263_v50  ;;  %v2073_v9 = vadd.f32 %v1773_v5, %v271_v51  ;;  %v1779_v14 = vmax.f32 %v2071_v61, 0.0 }
 0x1ba   :  { %v1806_v10 = vmul.f32 %v1789_v55, %v1776_v0  ;;  %v1780_v11 = vmax.f32 %v2068_v2, 0.0  ;;  %v1782_v15 = vmax.f32 %v2072_v3, 0.0  ;;  %v1808_v18 = vmul.f32 %v1797_v1, %v1778_v6 }
 0x1bb   :  { %v1807_v13 = vmul.f32 %v1793_v60, %v1777_v7  ;;  %v1781_v16 = vmax.f32 %v2069_v8, 0.0  ;;  %v1783_v20 = vmax.f32 %v2073_v9, 0.0  ;;  %v1809_v24 = vmul.f32 %v1801_v12, %v1779_v14 }
 0x1bc   :  { %v1810_v17 = vmul.f32 %v1789_v55, %v1780_v11  ;;  %v1812_v22 = vmul.f32 %v1797_v1, %v1782_v15 }
 0x1bd   :  { %v1811_v19 = vmul.f32 %v1793_v60, %v1781_v16  ;;  %v1814_v21 = vadd.f32 %v1807_v13, %v1806_v10  ;;  %v1813_v26 = vmul.f32 %v1801_v12, %v1783_v20 }
 0x1bf   :  { %v1815_v23 = vadd.f32 %v1811_v19, %v1810_v17  ;;  %v1816_v25 = vadd.f32 %v1814_v21, %v1808_v18 }
 0x1c1   :  { %v1818_v27 = vadd.f32 %v1816_v25, %v1809_v24  ;;  %v1817_v28 = vadd.f32 %v1815_v23, %v1812_v22 }
 0x1c3   :  { %1820 = vadd.xlane.f32.xlu0 %v1818_v27  ;;  %v1819_v29 = vadd.f32 %v1817_v28, %v1813_v26 }
 0x1c7   :  { %1822 = vadd.xlane.f32.xlu0 %v1819_v29 }
 0x250   :  { %v1821_v31 = vpop.xlane.xlu0 %1820 }
 0x251   :  { %v1826_v32 = vadd.f32 %v1825_v30, %v1821_v31 }
 0x253   :  { %1829 = vst.msk [vmem:[%s3189_s5] sm:$0xff] %vm1828_vm0, %v1826_v32 }
 0x254   :  { %v1823_v33 = vpop.xlane.xlu0 %1822 }
 0x255   :  { %v1827_v34 = vadd.f32 %v1825_v30, %v1823_v33 }
 0x257   :  { %1830 = vst.msk [vmem:[%s3189_s5 + $0x8] sm:$0xff] %vm1828_vm0, %v1827_v34 }

</bundles_post_ra>
